<compile_context>
chip_gen: v7x
topology: tpu7x:2x2x1
jax: 0.10.0
libtpu: 0.0.40
codegen_flags: <defaults>
</compile_context>

<pallas_src>
import functools

import jax
import jax.numpy as jnp
from jax import lax
from jax.experimental import pallas as pl
from jax.experimental.pallas import tpu as pltpu


def _round_up(x, m):
    return (x + m - 1) // m * m


def _disc_kernel(x_ref, w1_ref, b1_ref, w2_ref, b2_ref, o_ref, *, second_matmul, tile_b):
    # x_ref:  (TB, D)            w1_ref: (D, H)          b1_ref: (1, H)
    # w2_ref: (H, 1) ["h_lhs"] or (1, H) ["w2_lhs"]      b2_ref: (1, 1) in SMEM
    # o_ref:  (1, TB)  lane-dense output row
    x = x_ref[...]

    # Linear 1 on the MXU (f32 accumulation) + bias.
    h = jnp.dot(x, w1_ref[...], preferred_element_type=jnp.float32) + b1_ref[...]

    # LeakyReLU(0.1): mul + max.
    h = jnp.maximum(h, 0.1 * h)

    if second_matmul == "h_lhs":
        # (TB,H) @ (H,1) -> (TB,1): the big h tile is never transposed; only the
        # tiny (TB,1) result is relaid out to the lane-dense (1,TB) row.
        z = jnp.dot(h, w2_ref[...], preferred_element_type=jnp.float32)
        z = z.reshape(1, tile_b)
    else:
        # (1,H) x (TB,H) contracting H -> (1,TB). Mosaic owns the transpose;
        # TODO(synk): confirm via bundle dump that this does not transpose all
        # of h through the XLU at large tile_b (if it does, prefer "h_lhs").
        z = lax.dot_general(
            w2_ref[...], h,
            dimension_numbers=(((1,), (1,)), ((), ())),
            preferred_element_type=jnp.float32,
        )

    z = z + b2_ref[0, 0]

    # Sigmoid: EUP exp + approximate reciprocal (~1e-3 rel error vs exact).
    e = jnp.exp(-z)
    o_ref[...] = pl.reciprocal(1.0 + e, approx=True).astype(o_ref.dtype)


def discriminator_forward(x, w1, b1, w2, b2, *, tile_b=None,
                          vmem_limit_bytes=32 * 1024 * 1024,
                          second_matmul="h_lhs", x_buffers=None):
    """Fused discriminator forward.

    x:  (B, D) input (f32 or bf16; bf16 halves the dominant HBM stream).
    w1: (D, H) first-layer weight (transposed vs. torch storage), f32.
    b1: (1, H) first-layer bias, f32.
    w2: second-layer weight, (H, 1) or (1, H), f32.
    b2: (1, 1) second-layer bias, f32.
    Returns (B, 1) f32 sigmoid scores.
    """
    B, D = x.shape
    H = w1.shape[1]
    assert w1.shape == (D, H) and b1.shape == (1, H)
    assert w2.size == H and b2.shape == (1, 1)
    assert second_matmul in ("h_lhs", "w2_lhs")

    # Honor x's dtype for the MXU inputs; only the tiny w1 is cast (free).
    if x.dtype != w1.dtype:
        w1 = w1.astype(x.dtype)

    w2_arg = w2.reshape(H, 1) if second_matmul == "h_lhs" else w2.reshape(1, H)

    # Large, 128-aligned batch tile. No wrapper-side padding of x: the grid is
    # cdiv(B, tile_b) and the last block is a partial block (only valid rows
    # are DMA'd; garbage rows are row-local and sliced off below).
    if tile_b is None:
        tile_b = min(8192, _round_up(B, 128))
    tile_b = max(128, _round_up(tile_b, 128))
    num_tiles = pl.cdiv(B, tile_b)
    out_lanes = num_tiles * tile_b

    x_spec_kwargs = {}
    if x_buffers is not None:
        x_spec_kwargs["pipeline_mode"] = pl.Buffered(x_buffers)
    x_spec = pl.BlockSpec((tile_b, D), lambda i: (i, 0), **x_spec_kwargs)

    cost = pl.CostEstimate(
        flops=2 * B * H * (D + 1),
        transcendentals=2 * B,
        bytes_accessed=(B * D * jnp.dtype(x.dtype).itemsize
                        + D * H * jnp.dtype(w1.dtype).itemsize
                        + (2 * H + 1) * 4
                        + out_lanes * 4),
    )

    out = pl.pallas_call(
        functools.partial(_disc_kernel, second_matmul=second_matmul, tile_b=tile_b),
        out_shape=jax.ShapeDtypeStruct((1, out_lanes), jnp.float32),
        grid_spec=pltpu.PrefetchScalarGridSpec(
            num_scalar_prefetch=0,
            grid=(num_tiles,),
            in_specs=[
                x_spec,                                             # x batch tile (streamed)
                pl.BlockSpec((D, H), lambda i: (0, 0)),             # w1 (resident)
                pl.BlockSpec((1, H), lambda i: (0, 0)),             # b1 (resident)
                pl.BlockSpec(w2_arg.shape, lambda i: (0, 0)),       # w2 (resident)
                pl.BlockSpec(memory_space=pltpu.MemorySpace.SMEM),  # b2 scalar
            ],
            out_specs=pl.BlockSpec((1, tile_b), lambda i: (0, i)),  # lane-dense
        ),
        compiler_params=pltpu.CompilerParams(
            dimension_semantics=("parallel",),
            vmem_limit_bytes=vmem_limit_bytes,
        ),
        cost_estimate=cost,
    )(x, w1, b1, w2_arg, b2)

    # (1, out_lanes) lane-dense slab -> (B, 1); trailing garbage lanes (from the
    # partial last block) are discarded here.
    return out.reshape(out_lanes, 1)[:B]


def _init_linear(key, fan_in, fan_out):
    """torch.nn.Linear-style init: U(-1/sqrt(fan_in), 1/sqrt(fan_in))."""
    kw, kb = jax.random.split(key)
    bound = 1.0 / jnp.sqrt(float(fan_in))
    w = jax.random.uniform(kw, (fan_in, fan_out), jnp.float32, -bound, bound)
    b = jax.random.uniform(kb, (1, fan_out), jnp.float32, -bound, bound)
    return w, b


def reference_forward(x, w1, b1, w2_col, b2):
    h = x.astype(jnp.float32) @ w1 + b1
    h = jnp.where(h > 0, h, 0.1 * h)
    z = h @ w2_col + b2
    return jax.nn.sigmoid(z)


if __name__ == "__main__":
    key = jax.random.PRNGKey(0)
    k_x, k_l1, k_l2, k_x2 = jax.random.split(key, 4)

    IN_FEATURES = 32
    HIDDEN = 128

    w1, b1 = _init_linear(k_l1, IN_FEATURES, HIDDEN)
    w2_col, b2 = _init_linear(k_l2, HIDDEN, 1)   # (H, 1) / (1, 1)

    # Small batch (module-consistent shape), default tile, default matmul form.
    B = 8
    x = jax.random.normal(k_x, (B, IN_FEATURES), jnp.float32)
    out = jax.block_until_ready(discriminator_forward(x, w1, b1, w2_col, b2))
    ref = reference_forward(x, w1, b1, w2_col, b2)
    assert out.shape == (B, 1), out.shape
    assert jnp.allclose(out, ref, atol=5e-3, rtol=5e-3), "mismatch (small batch, h_lhs)"

    # Same inputs through the alternative second-matmul formulation.
    out_alt = jax.block_until_ready(
        discriminator_forward(x, w1, b1, w2_col, b2, second_matmul="w2_lhs"))
    assert jnp.allclose(out_alt, ref, atol=5e-3, rtol=5e-3), "mismatch (small batch, w2_lhs)"

    # Ragged, multi-tile batch: exercises cdiv grid + partial last block
    # (no wrapper-side padding pass) and explicit x double-buffering.
    B2 = 600
    x2 = jax.random.normal(k_x2, (B2, IN_FEATURES), jnp.float32)
    out2 = jax.block_until_ready(
        discriminator_forward(x2, w1, b1, w2_col, b2, tile_b=256, x_buffers=2))
    ref2 = reference_forward(x2, w1, b1, w2_col, b2)
    assert out2.shape == (B2, 1), out2.shape
    assert jnp.allclose(out2, ref2, atol=5e-3, rtol=5e-3), "mismatch (ragged batch)"

    # bf16-x path (x already bf16 "in HBM"): only w1 is cast, tolerance widened
    # for the expected mixed-precision error.
    x2_bf16 = x2.astype(jnp.bfloat16)
    out3 = jax.block_until_ready(discriminator_forward(x2_bf16, w1, b1, w2_col, b2))
    ref3 = reference_forward(x2_bf16, w1, b1, w2_col, b2)
    assert out3.shape == (B2, 1), out3.shape
    assert jnp.allclose(out3, ref3, atol=3e-2, rtol=3e-2), "mismatch (bf16 batch)"

    print("KERNEL_OK")
</pallas_src>

<mosaic_0001>
module attributes {stable_mosaic.version = 11 : i64} {
  func.func @_disc_kernel(%arg0: i32, %arg1: memref<128x32xf32, #tpu.memory_space<vmem>>, %arg2: memref<32x128xf32, #tpu.memory_space<vmem>>, %arg3: memref<1x128xf32, #tpu.memory_space<vmem>>, %arg4: memref<128x1xf32, #tpu.memory_space<vmem>>, %arg5: memref<1x1xf32, #tpu.memory_space<smem>>, %arg6: memref<1x128xf32, #tpu.memory_space<vmem>>) attributes {dimension_semantics = [#tpu.dimension_semantics<parallel>], iteration_bounds = array<i64: 1>, scalar_prefetch = 0 : i64, scratch_operands = 0 : i64, tpu.core_type = #tpu.core_type<tc>, window_params = [{transform_indices = @transform_0, window_bounds = array<i64: 128, 32>}, {pipeline_mode = #tpu.pipeline_mode<synchronous>, transform_indices = @transform_1, window_bounds = array<i64: 32, 128>}, {pipeline_mode = #tpu.pipeline_mode<synchronous>, transform_indices = @transform_2, window_bounds = array<i64: 1, 128>}, {pipeline_mode = #tpu.pipeline_mode<synchronous>, transform_indices = @transform_3, window_bounds = array<i64: 128, 1>}, {transform_indices = @transform_4, window_bounds = array<i64: 1, 1>}, {transform_indices = @transform_5, window_bounds = array<i64: 1, 128>}]} {
    %c0 = arith.constant 0 : index
    %c0_0 = arith.constant 0 : index
    %0 = vector.load %arg1[%c0, %c0_0] : memref<128x32xf32, #tpu.memory_space<vmem>>, vector<128x32xf32>
    %c0_1 = arith.constant 0 : index
    %c0_2 = arith.constant 0 : index
    %1 = vector.load %arg2[%c0_1, %c0_2] : memref<32x128xf32, #tpu.memory_space<vmem>>, vector<32x128xf32>
    %cst = arith.constant dense<0.000000e+00> : vector<128x128xf32>
    %2 = tpu.matmul %0, %1, %cst {dimension_numbers = #tpu.dot_dimension_numbers<[1], [0], [0], [1], [0, 0, 1, 1], [], []>} : vector<128x32xf32>, vector<32x128xf32>, vector<128x128xf32> -> vector<128x128xf32>
    %c0_3 = arith.constant 0 : index
    %c0_4 = arith.constant 0 : index
    %3 = vector.load %arg3[%c0_3, %c0_4] : memref<1x128xf32, #tpu.memory_space<vmem>>, vector<1x128xf32>
    %4 = vector.broadcast %3 : vector<1x128xf32> to vector<128x128xf32>
    %5 = arith.addf %2, %4 : vector<128x128xf32>
    %cst_5 = arith.constant 1.000000e-01 : f32
    %6 = vector.broadcast %cst_5 : f32 to vector<128x128xf32>
    %7 = arith.mulf %6, %5 : vector<128x128xf32>
    %8 = arith.maximumf %5, %7 : vector<128x128xf32>
    %c0_6 = arith.constant 0 : index
    %c0_7 = arith.constant 0 : index
    %9 = vector.load %arg4[%c0_6, %c0_7] : memref<128x1xf32, #tpu.memory_space<vmem>>, vector<128x1xf32>
    %cst_8 = arith.constant dense<0.000000e+00> : vector<128x1xf32>
    %10 = tpu.matmul %8, %9, %cst_8 {dimension_numbers = #tpu.dot_dimension_numbers<[1], [0], [0], [1], [0, 0, 1, 1], [], []>} : vector<128x128xf32>, vector<128x1xf32>, vector<128x1xf32> -> vector<128x1xf32>
    %11 = vector.shape_cast %10 : vector<128x1xf32> to vector<1x128xf32>
    %c0_9 = arith.constant 0 : index
    %c0_10 = arith.constant 0 : index
    %12 = memref.load %arg5[%c0_9, %c0_10] : memref<1x1xf32, #tpu.memory_space<smem>>
    %13 = vector.broadcast %12 : f32 to vector<1x128xf32>
    %14 = arith.addf %11, %13 : vector<1x128xf32>
    %cst_11 = arith.constant 0.000000e+00 : f32
    %15 = vector.broadcast %cst_11 : f32 to vector<1x128xf32>
    %16 = arith.subf %15, %14 : vector<1x128xf32>
    %17 = math.exp %16 : vector<1x128xf32>
    %cst_12 = arith.constant 1.000000e+00 : f32
    %18 = vector.broadcast %cst_12 : f32 to vector<1x128xf32>
    %19 = arith.addf %18, %17 : vector<1x128xf32>
    %20 = tpu.reciprocal %19 {approx = true} : vector<1x128xf32> -> vector<1x128xf32>
    %c0_13 = arith.constant 0 : index
    %c0_14 = arith.constant 0 : index
    %21 = vector.load %arg6[%c0_13, %c0_14] : memref<1x128xf32, #tpu.memory_space<vmem>>, vector<1x128xf32>
    tpu.vector_store %arg6[%c0_13, %c0_14], %20 {strides = array<i32>} : memref<1x128xf32, #tpu.memory_space<vmem>>, vector<1x128xf32>,
    return
  }
  func.func @transform_0(%arg0: i32) -> (i32, i32) {
    %c0_i32 = arith.constant 0 : i32
    %c0_i32_0 = arith.constant 0 : i32
    return %arg0, %c0_i32 : i32, i32
  }
  func.func @transform_1(%arg0: i32) -> (i32, i32) {
    %c0_i32 = arith.constant 0 : i32
    %c0_i32_0 = arith.constant 0 : i32
    %c0_i32_1 = arith.constant 0 : i32
    return %c0_i32, %c0_i32_0 : i32, i32
  }
  func.func @transform_2(%arg0: i32) -> (i32, i32) {
    %c0_i32 = arith.constant 0 : i32
    %c0_i32_0 = arith.constant 0 : i32
    %c0_i32_1 = arith.constant 0 : i32
    return %c0_i32, %c0_i32_0 : i32, i32
  }
  func.func @transform_3(%arg0: i32) -> (i32, i32) {
    %c0_i32 = arith.constant 0 : i32
    %c0_i32_0 = arith.constant 0 : i32
    %c0_i32_1 = arith.constant 0 : i32
    return %c0_i32, %c0_i32_0 : i32, i32
  }
  func.func @transform_4(%arg0: i32) -> (i32, i32) {
    %c0_i32 = arith.constant 0 : i32
    %c0_i32_0 = arith.constant 0 : i32
    %c0_i32_1 = arith.constant 0 : i32
    return %c0_i32, %c0_i32_0 : i32, i32
  }
  func.func @transform_5(%arg0: i32) -> (i32, i32) {
    %c0_i32 = arith.constant 0 : i32
    %c0_i32_0 = arith.constant 0 : i32
    return %c0_i32, %arg0 : i32, i32
  }
}

</mosaic_0001>

<bundles_post_ra>
// kernel: tpu_custom_call.1
= control target key start
LH: loop header
LB: loop body
LE: loop exit
PB: predicated region body
PF: predicated region fallthrough
CT: control target
= control target key end

     0   :  { %vm49_vm0 = vcmask 261120   ;;  %s1276_s0 = inlined_call_operand.vmem [shape: f32[8,32], index: 0, kind: input, shape index: {}]   ;;  %s1277_s1 = inlined_call_operand.vmem [shape: f32[32,128], index: 1, kind: input, shape index: {}]   ;;  %s1278_s2 = inlined_call_operand.vmem [shape: f32[1,128], index: 2, kind: input, shape index: {}]   ;;  %s1279_s3 = inlined_call_operand.vmem [shape: f32[128,1], index: 3, kind: input, shape index: {}]   ;;  %s1280_s4 = inlined_call_operand.<no memory space> [shape: f32[1,1], index: 4, kind: input, shape index: {}]   ;;  %s1281_s5 = inlined_call_operand.hbm [shape: f32[1,128], index: 5, kind: output, shape index: {}]  }
   0x1   :  { %v38_v0 = vld [vmem:[%s1277_s1] sm:$0xff]  ;;  %v39_v1 = vld [vmem:[%s1277_s1 + $0x8] sm:$0xff]  ;;  %v40_v2 = vld [vmem:[%s1277_s1 + $0x10] sm:$0xff] }
   0x2   :  { %v882_v3 = vpack.c.bf16 %v39_v1, %v38_v0  ;;  %v41_v4 = vld [vmem:[%s1277_s1 + $0x18] sm:$0xff]  ;;  %v22_v5 = vld [vmem:[%s1276_s0] sm:$0xff]  ;;  %v276_v8 = vld [vmem:[%s1279_s3 + $0x8] sm:$0xff] }
   0x3   :  { %v886_v6 = vpack.c.bf16 %v41_v4, %v40_v2  ;;  %802 = vmatprep.mubr.msk.f32.mxu0 %vm49_vm0, %v22_v5  ;;  %v275_v7 = vld [vmem:[%s1279_s3] sm:$0xff]  ;;  %v277_v9 = vld [vmem:[%s1279_s3 + $0x10] sm:$0xff]  ;;  %v278_v10 = vld [vmem:[%s1279_s3 + $0x18] sm:$0xff] }
   0x4   :  { %883 = vmatprep.subr.bf16.mxu0 %v882_v3  ;;  %v23_v11 = vld [vmem:[%s1276_s0 + $0x8] sm:$0xff]  ;;  %v890_v12 = vpack.c.bf16 %v276_v8, %v275_v7  ;;  %v24_v13 = vld [vmem:[%s1276_s0 + $0x10] sm:$0xff]  ;;  %v894_v14 = vpack.c.bf16 %v278_v10, %v277_v9  ;;  %v279_v15 = vld [vmem:[%s1279_s3 + $0x20] sm:$0xff] }
   0x5   :  { %885 = vmatpush3.bf16.msra.mxu0 %v882_v3  ;;  %v280_v16 = vld [vmem:[%s1279_s3 + $0x28] sm:$0xff] }
   0x6   :  { %887 = vmatprep.subr.bf16.mxu0 %v886_v6  ;;  %922 = vmatprep.subr.bf16.mxu1 %v890_v12 }
   0x9   :  { %889 = vmatpush3.bf16.msra.mxu0 %v886_v6 }
   0xa   :  { %891 = vmatprep.subr.bf16.mxu0 %v890_v12 }
   0xb   :  { %11 = vsyncpa [#allocation4], 0  ;;  %930 = vmatpush3.bf16.msra.mxu1 %v890_v12  ;;  %v25_v17 = vld [vmem:[%s1276_s0 + $0x18] sm:$0xff]  ;;  %v26_v18 = vld [vmem:[%s1276_s0 + $0x20] sm:$0xff]  ;;  %v898_v19 = vpack.c.bf16 %v280_v16, %v279_v15  ;;  %vm609_vm1 = vcmask 130112   ;;  %vm616_vm2 = vcmask 195712  }
   0xc   :  { %803 = vmatmul.mubr.msk.f32.vlgmr.msra.gmra.mrb[0].mxu0 %vm49_vm0, %v23_v11  ;;  %923 = vmatprep.subr.bf16.mxu1 %v894_v14  ;;  %v281_v20 = vld [vmem:[%s1279_s3 + $0x30] sm:$0xff]  ;;  %v282_v21 = vld [vmem:[%s1279_s3 + $0x38] sm:$0xff]  ;;  %v27_v22 = vld [vmem:[%s1276_s0 + $0x28] sm:$0xff]  ;;  %vm623_vm3 = vcmask 261312   ;;  %vm630_vm4 = vcmask 326912   ;;  %vm637_vm5 = vcmask 392512  }
   0xd   :  { %805 = vmatprep.mubr.msk.f32.mxu0 %vm49_vm0, %v24_v13  ;;  %893 = vmatpush3.bf16.msra.mxu0 %v890_v12  ;;  %v28_v23 = vld [vmem:[%s1276_s0 + $0x30] sm:$0xff]  ;;  %v902_v24 = vpack.c.bf16 %v282_v21, %v281_v20  ;;  %v283_v25 = vld [vmem:[%s1279_s3 + $0x40] sm:$0xff]  ;;  %v284_v26 = vld [vmem:[%s1279_s3 + $0x48] sm:$0xff]  ;;  %vm644_vm6 = vcmask 458112   ;;  %vm651_vm7 = vcmask 523712   ;;  %vm658_vm8 = vcmask 589312  }
   0xe   :  { %895 = vmatprep.subr.bf16.mxu0 %v894_v14  ;;  %v29_v27 = vld [vmem:[%s1276_s0 + $0x38] sm:$0xff]  ;;  %v30_v28 = vld [vmem:[%s1276_s0 + $0x40] sm:$0xff]  ;;  %v906_v29 = vpack.c.bf16 %v284_v26, %v283_v25  ;;  %v285_v30 = vld [vmem:[%s1279_s3 + $0x50] sm:$0xff]  ;;  %vm665_vm9 = vcmask 654912   ;;  %vm672_vm10 = vcmask 720512   ;;  %vm679_vm11 = vcmask 786112  }
   0xf   :  { %931 = vmatpush3.bf16.msra.mxu1 %v894_v14  ;;  %v286_v31 = vld [vmem:[%s1279_s3 + $0x58] sm:$0xff]  ;;  %v31_v32 = vld [vmem:[%s1276_s0 + $0x48] sm:$0xff]  ;;  %v32_v33 = vld [vmem:[%s1276_s0 + $0x50] sm:$0xff]  ;;  %vm686_vm12 = vcmask 851712   ;;  %vm693_vm13 = vcmask 917312   ;;  %vm700_vm14 = vcmask 982912  }
  0x10   :  { %806 = vmatmul.mubr.msk.f32.gmra.mrb[2].mxu0 %vm49_vm0, %v25_v17  ;;  %924 = vmatprep.subr.bf16.mxu1 %v898_v19  ;;  %v910_v34 = vpack.c.bf16 %v286_v31, %v285_v30  ;;  %v33_v35 = vld [vmem:[%s1276_s0 + $0x58] sm:$0xff]  ;;  %v34_v36 = vld [vmem:[%s1276_s0 + $0x60] sm:$0xff]  ;;  %v35_v37 = vld [vmem:[%s1276_s0 + $0x68] sm:$0xff]  ;;  %vm707_vm15 = vcmask 1048512  }
  0x11   :  { %808 = vmatprep.mubr.msk.f32.mxu0 %vm49_vm0, %v26_v18  ;;  %897 = vmatpush3.bf16.msra.mxu0 %v894_v14  ;;  %v36_v38 = vld [vmem:[%s1276_s0 + $0x70] sm:$0xff]  ;;  %v37_v39 = vld [vmem:[%s1276_s0 + $0x78] sm:$0xff]  ;;  %v287_v40 = vld [vmem:[%s1279_s3 + $0x60] sm:$0xff] }
  0x12   :  { %899 = vmatprep.subr.bf16.mxu0 %v898_v19  ;;  %v288_v41 = vld [vmem:[%s1279_s3 + $0x68] sm:$0xff]  ;;  %v289_v43 = vld [vmem:[%s1279_s3 + $0x70] sm:$0xff]  ;;  %v290_v44 = vld [vmem:[%s1279_s3 + $0x78] sm:$0xff] }
  0x13   :  { %932 = vmatpush3.bf16.msra.mxu1 %v898_v19  ;;  %v914_v42 = vpack.c.bf16 %v288_v41, %v287_v40  ;;  %v918_v45 = vpack.c.bf16 %v290_v44, %v289_v43  ;;  %v1189_v46 = vld [vmem:[%s1278_s2] ss:$0 sm:$0xff] }
  0x14   :  { %809 = vmatmul.mubr.msk.f32.gmra.mrb[4].mxu0 %vm49_vm0, %v27_v22  ;;  %925 = vmatprep.subr.bf16.mxu1 %v902_v24 }
  0x15   :  { %811 = vmatprep.mubr.msk.f32.mxu0 %vm49_vm0, %v28_v23  ;;  %901 = vmatpush3.bf16.msra.mxu0 %v898_v19 }
  0x16   :  { %903 = vmatprep.subr.bf16.mxu0 %v902_v24 }
  0x17   :  { %933 = vmatpush3.bf16.msra.mxu1 %v902_v24 }
  0x18   :  { %812 = vmatmul.mubr.msk.f32.gmra.mrb[6].mxu0 %vm49_vm0, %v29_v27  ;;  %926 = vmatprep.subr.bf16.mxu1 %v906_v29 }
  0x19   :  { %814 = vmatprep.mubr.msk.f32.mxu0 %vm49_vm0, %v30_v28  ;;  %905 = vmatpush3.bf16.msra.mxu0 %v902_v24 }
  0x1a   :  { %907 = vmatprep.subr.bf16.mxu0 %v906_v29 }
  0x1b   :  { %934 = vmatpush3.bf16.msra.mxu1 %v906_v29 }
  0x1c   :  { %815 = vmatmul.mubr.msk.f32.gmra.mrb[8].mxu0 %vm49_vm0, %v31_v32  ;;  %927 = vmatprep.subr.bf16.mxu1 %v910_v34 }
  0x1d   :  { %817 = vmatprep.mubr.msk.f32.mxu0 %vm49_vm0, %v32_v33  ;;  %909 = vmatpush3.bf16.msra.mxu0 %v906_v29 }
  0x1e   :  { %911 = vmatprep.subr.bf16.mxu0 %v910_v34 }
  0x1f   :  { %935 = vmatpush3.bf16.msra.mxu1 %v910_v34 }
  0x20   :  { %818 = vmatmul.mubr.msk.f32.gmra.mrb[10].mxu0 %vm49_vm0, %v33_v35  ;;  %928 = vmatprep.subr.bf16.mxu1 %v914_v42 }
  0x21   :  { %820 = vmatprep.mubr.msk.f32.mxu0 %vm49_vm0, %v34_v36  ;;  %913 = vmatpush3.bf16.msra.mxu0 %v910_v34 }
  0x22   :  { %915 = vmatprep.subr.bf16.mxu0 %v914_v42 }
  0x23   :  { %936 = vmatpush3.bf16.msra.mxu1 %v914_v42 }
  0x24   :  { %821 = vmatmul.mubr.msk.f32.gmra.mrb[12].mxu0 %vm49_vm0, %v35_v37  ;;  %929 = vmatprep.subr.bf16.mxu1 %v918_v45 }
  0x25   :  { %823 = vmatprep.mubr.msk.f32.mxu0 %vm49_vm0, %v36_v38  ;;  %917 = vmatpush3.bf16.msra.mxu0 %v914_v42 }
  0x26   :  { %919 = vmatprep.subr.bf16.mxu0 %v918_v45 }
  0x27   :  { %937 = vmatpush3.bf16.msra.mxu1 %v918_v45 }
  0x28   :  { %824 = vmatmul.mubr.msk.f32.gmra.mrb[14].mxu0 %vm49_vm0, %v37_v39 }
  0x29   :  { %921 = vmatpush3.bf16.msra.mxu0 %v918_v45 }
  0xdf   :  { %v804_v47 = vpop.f32.mrb[0].mxu0 }
  0xe0   :  { %v170_v48 = vadd.f32 %v804_v47, %v1189_v46  ;;  %v164_v49 = vpop.f32.mrb[1].mxu0 }
  0xe1   :  { %v165_v50 = vadd.f32 %v1189_v46, %v164_v49  ;;  %v1210_v49 = vstv %s1280_s4  ;;  %s1031_s4 = smov [#allocation3]  }
  0xe2   :  { %v244_v51 = vmul.f32 0.1, %v170_v48  ;;  %s717_s13 = sshll.u32 %s1031_s4, 4  ;;  %s718_s13 = int_to_ptr.vmem [resolvable:$true] %s717_s13 }
  0xe3   :  { %v243_v52 = vmul.f32 0.1, %v165_v50  ;;  %v807_v53 = vpop.f32.mrb[2].mxu0  ;;  %s1006_s14 = scalar_lea.vmem %s718_s13, 16  ;;  %s1010_s15 = scalar_lea.vmem %s718_s13, 32 }
  0xe4   :  { %v180_v54 = vadd.f32 %v807_v53, %v1189_v46  ;;  %v174_v55 = vpop.f32.mrb[3].mxu0  ;;  %v260_v58 = vmax.f32 %v170_v48, %v244_v51  ;;  %v1030_v48 = vmov 0   ;;  %p1007_p0 = scmp.ne.s32.totalorder %s718_s13, %s1006_s14  ;;  %p1011_p1 = scmp.lt.s32.totalorder %s718_s13, %s718_s13 }
  0xe5   :  { %v259_v56 = vmax.f32 %v165_v50, %v243_v52  ;;  %v175_v57 = vadd.f32 %v1189_v46, %v174_v55  ;;  %940 = vset.pattern.permute.xlu0 %v1030_v48  ;;  %941 = vset.pattern.permute.xlu1 %v1030_v48  ;;  %p1012_p2 = scmp.lt.s32.totalorder %s1010_s15, %s1006_s14 }
  0xe6   :  { %v246_v59 = vmul.f32 0.1, %v180_v54 }
  0xe7   :  { %v245_v60 = vmul.f32 0.1, %v175_v57  ;;  %v810_v61 = vpop.f32.mrb[4].mxu0  ;;  %858 = vmatprep.mubr.f32.mxu0 %v259_v56  ;;  %p1013_p3 = por %p1012_p2, %p1011_p1 }
  0xe8   :  { %v190_v62 = vadd.f32 %v810_v61, %v1189_v46  ;;  %v184_v63 = vpop.f32.mrb[5].mxu0  ;;  %859 = vmatmul.mubr.f32.vlgmr.msra.gmra.mrb[16].mxu0 %v260_v58  ;;  %v262_v2 = vmax.f32 %v180_v54, %v246_v59 }
  0xe9   :  { %v261_v0 = vmax.f32 %v175_v57, %v245_v60  ;;  %v185_v1 = vadd.f32 %v1189_v46, %v184_v63  ;;  %p1014_p4 = pnand %p1013_p3, %p1007_p0 }
  0xea   :  { %v248_v3 = vmul.f32 0.1, %v190_v62 }
  0xeb   :  { %v247_v4 = vmul.f32 0.1, %v185_v1  ;;  %v813_v5 = vpop.f32.mrb[6].mxu0  ;;  %861 = vmatprep.mubr.f32.mxu0 %v261_v0 }
  0xec   :  { %v200_v6 = vadd.f32 %v813_v5, %v1189_v46  ;;  %v194_v7 = vpop.f32.mrb[7].mxu0  ;;  %862 = vmatmul.mubr.f32.gmra.mrb[18].mxu0 %v262_v2  ;;  %v264_v10 = vmax.f32 %v190_v62, %v248_v3 }
  0xed   :  { %v263_v8 = vmax.f32 %v185_v1, %v247_v4  ;;  %v195_v9 = vadd.f32 %v1189_v46, %v194_v7 }
  0xee   :  { %v250_v11 = vmul.f32 0.1, %v200_v6 }
  0xef   :  { %v816_v12 = vpop.f32.mrb[8].mxu0  ;;  %864 = vmatprep.mubr.f32.mxu0 %v263_v8  ;;  %v249_v13 = vmul.f32 0.1, %v195_v9 }
  0xf0   :  { %v210_v14 = vadd.f32 %v816_v12, %v1189_v46  ;;  %v204_v15 = vpop.f32.mrb[9].mxu0  ;;  %865 = vmatmul.mubr.f32.gmra.mrb[20].mxu0 %v264_v10  ;;  %v266_v18 = vmax.f32 %v200_v6, %v250_v11 }
  0xf1   :  { %v205_v16 = vadd.f32 %v1189_v46, %v204_v15  ;;  %v265_v17 = vmax.f32 %v195_v9, %v249_v13 }
  0xf2   :  { %v252_v19 = vmul.f32 0.1, %v210_v14 }
  0xf3   :  { %v251_v20 = vmul.f32 0.1, %v205_v16  ;;  %v819_v21 = vpop.f32.mrb[10].mxu0  ;;  %867 = vmatprep.mubr.f32.mxu1 %v265_v17 }
  0xf4   :  { %v220_v22 = vadd.f32 %v819_v21, %v1189_v46  ;;  %v214_v23 = vpop.f32.mrb[11].mxu0  ;;  %868 = vmatmul.mubr.f32.vlgmr.msra.gmra.mrb[0].mxu1 %v266_v18  ;;  %v268_v26 = vmax.f32 %v210_v14, %v252_v19 }
  0xf5   :  { %v267_v24 = vmax.f32 %v205_v16, %v251_v20  ;;  %v215_v25 = vadd.f32 %v1189_v46, %v214_v23 }
  0xf6   :  { %v254_v27 = vmul.f32 0.1, %v220_v22 }
  0xf7   :  { %v253_v28 = vmul.f32 0.1, %v215_v25  ;;  %v822_v29 = vpop.f32.mrb[12].mxu0  ;;  %870 = vmatprep.mubr.f32.mxu1 %v267_v24 }
  0xf8   :  { %v230_v30 = vadd.f32 %v822_v29, %v1189_v46  ;;  %v224_v31 = vpop.f32.mrb[13].mxu0  ;;  %871 = vmatmul.mubr.f32.gmra.mrb[2].mxu1 %v268_v26  ;;  %v270_v34 = vmax.f32 %v220_v22, %v254_v27 }
  0xf9   :  { %v269_v32 = vmax.f32 %v215_v25, %v253_v28  ;;  %v225_v33 = vadd.f32 %v1189_v46, %v224_v31 }
  0xfa   :  { %v256_v35 = vmul.f32 0.1, %v230_v30 }
  0xfb   :  { %v255_v36 = vmul.f32 0.1, %v225_v33  ;;  %v825_v37 = vpop.f32.mrb[14].mxu0  ;;  %873 = vmatprep.mubr.f32.mxu1 %v269_v32 }
  0xfc   :  { %v240_v38 = vadd.f32 %v825_v37, %v1189_v46  ;;  %v234_v39 = vpop.f32.mrb[15].mxu0  ;;  %874 = vmatmul.mubr.f32.gmra.mrb[4].mxu1 %v270_v34  ;;  %v272_v42 = vmax.f32 %v230_v30, %v256_v35 }
  0xfd   :  { %v271_v40 = vmax.f32 %v225_v33, %v255_v36  ;;  %v235_v41 = vadd.f32 %v1189_v46, %v234_v39 }
  0xfe   :  { %v258_v43 = vmul.f32 0.1, %v240_v38 }
  0xff   :  { %v257_v44 = vmul.f32 0.1, %v235_v41  ;;  %876 = vmatprep.mubr.f32.mxu1 %v271_v40 }
 0x100   :  { %877 = vmatmul.mubr.f32.gmra.mrb[6].mxu1 %v272_v42  ;;  %v274_v47 = vmax.f32 %v240_v38, %v258_v43 }
 0x101   :  { %v273_v45 = vmax.f32 %v235_v41, %v257_v44 }
 0x103   :  { %879 = vmatprep.mubr.f32.mxu1 %v273_v45 }
 0x104   :  { %880 = vmatmul.mubr.f32.gmra.mrb[8].mxu1 %v274_v47 }
 0x1bb   :  { %v860_v50 = vpop.f32.mrb[16].mxu0 }
 0x1bc   :  { %v439_v46 = vadd.f32 %v860_v50, %v1210_v49  ;;  %v357_v51 = vpop.f32.mrb[17].mxu0 }
 0x1bd   :  { %v438_v52 = vadd.f32 %v1210_v49, %v357_v51 }
 0x1be   :  { %v455_v53 = vsub.f32 0.0, %v439_v46 }
 0x1bf   :  { %v454_v54 = vsub.f32 0.0, %v438_v52  ;;  %v863_v55 = vpop.f32.mrb[18].mxu0 }
 0x1c0   :  { %v472_v56 = vmul.f32 1.442695, %v455_v53  ;;  %v441_v57 = vadd.f32 %v863_v55, %v1210_v49  ;;  %v367_v58 = vpop.f32.mrb[19].mxu0 }
 0x1c1   :  { %v470_v59 = vmul.f32 1.442695, %v454_v54  ;;  %v440_v60 = vadd.f32 %v1210_v49, %v367_v58 }
 0x1c2   :  { %942 = vpow2.f32 %v472_v56  ;;  %v457_v61 = vsub.f32 0.0, %v441_v57 }
 0x1c3   :  { %944 = vpow2.f32 %v470_v59  ;;  %v456_v62 = vsub.f32 0.0, %v440_v60  ;;  %v866_v63 = vpop.f32.mrb[20].mxu0 }
 0x1c4   :  { %v476_v0 = vmul.f32 1.442695, %v457_v61  ;;  %v443_v1 = vadd.f32 %v866_v63, %v1210_v49  ;;  %v377_v2 = vpop.f32.mrb[21].mxu0 }
 0x1c5   :  { %v474_v3 = vmul.f32 1.442695, %v456_v62  ;;  %v442_v4 = vadd.f32 %v1210_v49, %v377_v2 }
 0x1c6   :  { %946 = vpow2.f32 %v476_v0  ;;  %v459_v5 = vsub.f32 0.0, %v443_v1 }
 0x1c7   :  { %948 = vpow2.f32 %v474_v3  ;;  %v458_v6 = vsub.f32 0.0, %v442_v4  ;;  %v869_v7 = vpop.f32.mrb[0].mxu1 }
 0x1c8   :  { %v480_v8 = vmul.f32 1.442695, %v459_v5  ;;  %v445_v9 = vadd.f32 %v869_v7, %v1210_v49  ;;  %v387_v10 = vpop.f32.mrb[1].mxu1 }
 0x1c9   :  { %v478_v11 = vmul.f32 1.442695, %v458_v6  ;;  %v444_v12 = vadd.f32 %v1210_v49, %v387_v10 }
 0x1ca   :  { %950 = vpow2.f32 %v480_v8  ;;  %v461_v13 = vsub.f32 0.0, %v445_v9 }
 0x1cb   :  { %952 = vpow2.f32 %v478_v11  ;;  %v460_v14 = vsub.f32 0.0, %v444_v12  ;;  %v872_v15 = vpop.f32.mrb[2].mxu1 }
 0x1cc   :  { %v943_v16 = vpop.eup %942  ;;  %v484_v17 = vmul.f32 1.442695, %v461_v13  ;;  %v447_v18 = vadd.f32 %v872_v15, %v1210_v49  ;;  %v397_v19 = vpop.f32.mrb[3].mxu1 }
 0x1cd   :  { %v945_v20 = vpop.eup %944  ;;  %v503_v21 = vadd.f32 1.0, %v943_v16  ;;  %v482_v22 = vmul.f32 1.442695, %v460_v14  ;;  %v446_v23 = vadd.f32 %v1210_v49, %v397_v19 }
 0x1ce   :  { %v502_v24 = vadd.f32 1.0, %v945_v20  ;;  %954 = vpow2.f32 %v484_v17  ;;  %v463_v25 = vsub.f32 0.0, %v447_v18 }
 0x1cf   :  { %956 = vrcp.f32 %v503_v21  ;;  %v462_v26 = vsub.f32 0.0, %v446_v23  ;;  %v875_v27 = vpop.f32.mrb[4].mxu1 }
 0x1d0   :  { %v947_v28 = vpop.eup %946  ;;  %958 = vrcp.f32 %v502_v24  ;;  %v488_v29 = vmul.f32 1.442695, %v463_v25  ;;  %v449_v30 = vadd.f32 %v875_v27, %v1210_v49  ;;  %v407_v31 = vpop.f32.mrb[5].mxu1 }
 0x1d1   :  { %v949_v32 = vpop.eup %948  ;;  %v505_v33 = vadd.f32 1.0, %v947_v28  ;;  %960 = vpow2.f32 %v482_v22  ;;  %v486_v34 = vmul.f32 1.442695, %v462_v26  ;;  %v448_v35 = vadd.f32 %v1210_v49, %v407_v31 }
 0x1d2   :  { %962 = vpow2.f32 %v488_v29  ;;  %v465_v36 = vsub.f32 0.0, %v449_v30  ;;  %v504_v37 = vadd.f32 1.0, %v949_v32 }
 0x1d3   :  { %964 = vrcp.f32 %v505_v33  ;;  %v464_v38 = vsub.f32 0.0, %v448_v35  ;;  %v878_v39 = vpop.f32.mrb[6].mxu1  ;;  %v598_v33 = vlaneseq }
 0x1d4   :  { %v951_v40 = vpop.eup %950  ;;  %v492_v41 = vmul.f32 1.442695, %v465_v36  ;;  %v451_v42 = vadd.f32 %v878_v39, %v1210_v49  ;;  %v417_v43 = vpop.f32.mrb[7].mxu1  ;;  %966 = vpow2.f32 %v486_v34 }
 0x1d5   :  { %v953_v44 = vpop.eup %952  ;;  %v490_v45 = vmul.f32 1.442695, %v464_v38  ;;  %v450_v47 = vadd.f32 %v1210_v49, %v417_v43  ;;  %v507_v46 = vadd.f32 1.0, %v951_v40  ;;  %v1228_v34 = vand.u32 127, %v598_v33 }
 0x1d6   :  { %v506_v48 = vadd.f32 1.0, %v953_v44  ;;  %968 = vpow2.f32 %v492_v41  ;;  %v467_v50 = vsub.f32 0.0, %v451_v42  ;;  %v1230_v35 = vshrl.u32 %v598_v33, 7 }
 0x1d7   :  { %970 = vrcp.f32 %v504_v37  ;;  %v466_v51 = vsub.f32 0.0, %v450_v47  ;;  %v881_v52 = vpop.f32.mrb[8].mxu1  ;;  %v604_v36 = vadd.s32 4294967288, %v1228_v34  ;;  %v611_v38 = vadd.s32 4294967280, %v1228_v34 }
 0x1d8   :  { %v955_v53 = vpop.eup %954  ;;  %972 = vrcp.f32 %v506_v48  ;;  %v496_v54 = vmul.f32 1.442695, %v467_v50  ;;  %v453_v55 = vadd.f32 %v881_v52, %v1210_v49  ;;  %v427_v56 = vpop.f32.mrb[9].mxu1  ;;  %v602_v39 = vsub.s32 %v1228_v34, %v1230_v35 }
 0x1d9   :  { %v957_v57 = vpop.eup %956  ;;  %974 = vpow2.f32 %v490_v45  ;;  %v494_v58 = vmul.f32 1.442695, %v466_v51  ;;  %v452_v59 = vadd.f32 %v1210_v49, %v427_v56  ;;  %v509_v63 = vadd.f32 1.0, %v955_v53 }
 0x1da   :  { %v959_v60 = vpop.eup %958  ;;  %976 = vpow2.f32 %v496_v54  ;;  %v469_v61 = vsub.f32 0.0, %v453_v55  ;;  %554 = vperm.xlu0 %940, %v957_v57   ;;  %v618_v40 = vadd.s32 4294967272, %v1228_v34  ;;  %v625_v41 = vadd.s32 4294967264, %v1228_v34 }
 0x1db   :  { %v961_v62 = vpop.eup %960  ;;  %978 = vrcp.f32 %v507_v46  ;;  %v468_v0 = vsub.f32 0.0, %v452_v59  ;;  %v607_v42 = vsub.s32 %v604_v36, %v1230_v35  ;;  %v614_v45 = vsub.s32 %v611_v38, %v1230_v35 }
 0x1dc   :  { %v963_v1 = vpop.eup %962  ;;  %v508_v2 = vadd.f32 1.0, %v961_v62  ;;  %980 = vpow2.f32 %v494_v58  ;;  %v500_v3 = vmul.f32 1.442695, %v469_v61  ;;  %v632_v47 = vadd.s32 4294967256, %v1228_v34 }
 0x1dd   :  { %v965_v4 = vpop.eup %964  ;;  %v498_v5 = vmul.f32 1.442695, %v468_v0  ;;  %v511_v49 = vadd.f32 1.0, %v963_v1  ;;  %v621_v50 = vsub.s32 %v618_v40, %v1230_v35  ;;  %v628_v46 = vsub.s32 %v625_v41, %v1230_v35 }
 0x1de   :  { %982 = vrcp.f32 %v508_v2  ;;  %551 = vperm.xlu0 %940, %v959_v60   ;;  %560 = vperm.xlu1 %941, %v965_v4   ;;  %v967_v6 = vpop.eup %966  ;;  %v639_v53 = vadd.s32 4294967248, %v1228_v34  ;;  %v635_v56 = vsub.s32 %v632_v47, %v1230_v35  ;;  %v646_v57 = vadd.s32 4294967240, %v1228_v34 }
 0x1df   :  { %984 = vrcp.f32 %v509_v63  ;;  %v510_v8 = vadd.f32 1.0, %v967_v6  ;;  %v653_v1 = vadd.s32 4294967232, %v1228_v34  ;;  %v702_v33 = vadd.s32 4294967176, %v1228_v34 }
 0x1e0   :  { %v969_v7 = vpop.eup %968  ;;  %986 = vpow2.f32 %v500_v3  ;;  %v642_v0 = vsub.s32 %v639_v53, %v1230_v35  ;;  %v649_v4 = vsub.s32 %v646_v57, %v1230_v35 }
 0x1e1   :  { %v971_v9 = vpop.eup %970  ;;  %988 = vpow2.f32 %v498_v5  ;;  %v513_v12 = vadd.f32 1.0, %v969_v7  ;;  %v660_v5 = vadd.s32 4294967224, %v1228_v34 }
 0x1e2   :  { %v973_v10 = vpop.eup %972  ;;  %990 = vrcp.f32 %v510_v8  ;;  %557 = vperm.xlu1 %941, %v971_v9   ;;  %v656_v9 = vsub.s32 %v653_v1, %v1230_v35 }
 0x1e3   :  { %v975_v11 = vpop.eup %974  ;;  %992 = vrcp.f32 %v511_v49  ;;  %563 = vperm.xlu0 %940, %v973_v10   ;;  %v667_v10 = vadd.s32 4294967216, %v1228_v34 }
 0x1e4   :  { %v977_v13 = vpop.eup %976  ;;  %v512_v14 = vadd.f32 1.0, %v975_v11 }
 0x1e5   :  { %v979_v15 = vpop.eup %978  ;;  %v515_v17 = vadd.f32 1.0, %v977_v13  ;;  %v674_v13 = vadd.s32 4294967208, %v1228_v34 }
 0x1e6   :  { %v981_v16 = vpop.eup %980  ;;  %994 = vrcp.f32 %v512_v14  ;;  %566 = vperm.xlu1 %941, %v979_v15  }
 0x1e7   :  { %996 = vrcp.f32 %v513_v12  ;;  %v514_v18 = vadd.f32 1.0, %v981_v16  ;;  %v663_v12 = vsub.s32 %v660_v5, %v1230_v35 }
 0x1e8   :  { %v983_v19 = vpop.eup %982 }
 0x1e9   :  { %v985_v20 = vpop.eup %984  ;;  %998 = vrcp.f32 %v514_v18  ;;  %569 = vperm.xlu0 %940, %v983_v19   ;;  %v670_v19 = vsub.s32 %v667_v10, %v1230_v35 }
 0x1ea   :  { %v987_v21 = vpop.eup %986  ;;  %572 = vperm.xlu1 %941, %v985_v20   ;;  %1000 = vrcp.f32 %v515_v17  ;;  %v681_v20 = vadd.s32 4294967200, %v1228_v34 }
 0x1eb   :  { %v989_v22 = vpop.eup %988  ;;  %v517_v23 = vadd.f32 1.0, %v987_v21 }
 0x1ec   :  { %v991_v24 = vpop.eup %990  ;;  %v516_v25 = vadd.f32 1.0, %v989_v22  ;;  %v677_v22 = vsub.s32 %v674_v13, %v1230_v35 }
 0x1ed   :  { %v993_v26 = vpop.eup %992  ;;  %575 = vperm.xlu0 %940, %v991_v24  }
 0x1ee   :  { %1002 = vrcp.f32 %v516_v25  ;;  %578 = vperm.xlu1 %941, %v993_v26  }
 0x1ef   :  { %1004 = vrcp.f32 %v517_v23  ;;  %v688_v23 = vadd.s32 4294967192, %v1228_v34 }
 0x1f0   :  { %v995_v27 = vpop.eup %994 }
 0x1f1   :  { %v997_v28 = vpop.eup %996  ;;  %581 = vperm.xlu0 %940, %v995_v27  }
 0x1f2   :  { %584 = vperm.xlu1 %941, %v997_v28  }
 0x1f3   :  { %v999_v29 = vpop.eup %998 }
 0x1f4   :  { %v1001_v30 = vpop.eup %1000 }
 0x1f5   :  { %587 = vperm.xlu0 %940, %v999_v29   ;;  %v684_v29 = vsub.s32 %v681_v20, %v1230_v35 }
 0x1f6   :  { %590 = vperm.xlu1 %941, %v1001_v30   ;;  %v695_v30 = vadd.s32 4294967184, %v1228_v34 }
 0x1f8   :  { %v1003_v31 = vpop.eup %1002  ;;  %v698_v41 = vsub.s32 %v695_v30, %v1230_v35 }
 0x1f9   :  { %v1005_v32 = vpop.eup %1004  ;;  %593 = vperm.xlu0 %940, %v1003_v31  }
 0x1fa   :  { %596 = vperm.xlu1 %941, %v1005_v32   ;;  %v691_v32 = vsub.s32 %v688_v23, %v1230_v35 }
 0x259   :  { %v555_v37 = vpop.permute.xlu0 %554 }
 0x25a   :  { %v608_v51 = vrot.slane %v555_v37, %v607_v42 }
 0x25d   :  { %v552_v43 = vpop.permute.xlu0 %551  ;;  %v561_v44 = vpop.permute.xlu1 %560 }
 0x25e   :  { %v603_v48 = vrot.slane %v552_v43, %v602_v39  ;;  %v622_v59 = vrot.slane %v561_v44, %v621_v50  ;;  %v705_v43 = vsub.s32 %v702_v33, %v1230_v35 }
 0x260   :  { %v610_v58 = vsel %vm609_vm1, %v608_v51, %v603_v48 }
 0x261   :  { %v558_v52 = vpop.permute.xlu1 %557 }
 0x262   :  { %v615_v54 = vrot.slane %v558_v52, %v614_v45  ;;  %v564_v55 = vpop.permute.xlu0 %563 }
 0x263   :  { %v629_v60 = vrot.slane %v564_v55, %v628_v46 }
 0x264   :  { %v617_v61 = vsel %vm616_vm2, %v615_v54, %v610_v58 }
 0x265   :  { %v624_v62 = vsel %vm623_vm3, %v622_v59, %v617_v61  ;;  %v567_v63 = vpop.permute.xlu1 %566 }
 0x266   :  { %v631_v2 = vsel %vm630_vm4, %v629_v60, %v624_v62  ;;  %v636_v3 = vrot.slane %v567_v63, %v635_v56 }
 0x268   :  { %v638_v6 = vsel %vm637_vm5, %v636_v3, %v631_v2  ;;  %v570_v49 = vpop.permute.xlu0 %569 }
 0x269   :  { %v643_v7 = vrot.slane %v570_v49, %v642_v0  ;;  %v573_v8 = vpop.permute.xlu1 %572 }
 0x26a   :  { %v650_v11 = vrot.slane %v573_v8, %v649_v4 }
 0x26b   :  { %v645_v14 = vsel %vm644_vm6, %v643_v7, %v638_v6 }
 0x26c   :  { %v652_v15 = vsel %vm651_vm7, %v650_v11, %v645_v14  ;;  %v576_v16 = vpop.permute.xlu0 %575 }
 0x26d   :  { %v657_v17 = vrot.slane %v576_v16, %v656_v9  ;;  %v579_v18 = vpop.permute.xlu1 %578 }
 0x26e   :  { %v664_v21 = vrot.slane %v579_v18, %v663_v12 }
 0x26f   :  { %v659_v24 = vsel %vm658_vm8, %v657_v17, %v652_v15 }
 0x270   :  { %v666_v25 = vsel %vm665_vm9, %v664_v21, %v659_v24  ;;  %v582_v26 = vpop.permute.xlu0 %581 }
 0x271   :  { %v671_v27 = vrot.slane %v582_v26, %v670_v19  ;;  %v585_v28 = vpop.permute.xlu1 %584 }
 0x272   :  { %v678_v31 = vrot.slane %v585_v28, %v677_v22 }
 0x273   :  { %v673_v36 = vsel %vm672_vm10, %v671_v27, %v666_v25 }
 0x274   :  { %v680_v37 = vsel %vm679_vm11, %v678_v31, %v673_v36  ;;  %v588_v38 = vpop.permute.xlu0 %587 }
 0x275   :  { %v685_v39 = vrot.slane %v588_v38, %v684_v29  ;;  %v591_v40 = vpop.permute.xlu1 %590 }
 0x276   :  { %v692_v42 = vrot.slane %v591_v40, %v691_v32 }
 0x277   :  { %v687_v44 = vsel %vm686_vm12, %v685_v39, %v680_v37 }
 0x278   :  { %v694_v45 = vsel %vm693_vm13, %v692_v42, %v687_v44  ;;  %v594_v47 = vpop.permute.xlu0 %593 }
 0x279   :  { %v699_v48 = vrot.slane %v594_v47, %v698_v41  ;;  %v597_v34 = vpop.permute.xlu1 %596 }
 0x27a   :  { %v706_v50 = vrot.slane %v597_v34, %v705_v43 }
 0x27b   :  { %v701_v46 = vsel %vm700_vm14, %v699_v48, %v694_v45 }
 0x27c   :  { %v708_v51 = vsel %vm707_vm15, %v706_v50, %v701_v46 }
 0x27d   :  { %710 = vst [vmem:[#allocation3] sm:$0x1] %v708_v51 }
 0x27e   :  { %1017 = shalt.err (!%p1014_p4)
}
 0x27f   :  { %s1018_s18 = scalar_lea.hbm %s1281_s5, 16 }
 0x280   :  { %p1019_p5 = scmp.ne.s32.totalorder %s1281_s5, %s1018_s18  ;;  %p1022_p6 = scmp.lt.u32.totalorder %s1018_s18, %s1281_s5 }
 0x282   :  { %p1024_p7 = pnand %p1022_p6, %p1019_p5 }
 0x284   :  { %1027 = shalt.err (!%p1024_p7)
}
 0x285   :  { %720 = dma.vmem_to_hbm [thread:$0]  %s718_s13, 16, %s1281_s5, [#allocation4]  }
 0x286   :  { %1028 = dma.done.wait [#allocation4], 16  }
 0x287   :  { %1029 = vsyncadd [#allocation4], 4294967280 }
 0x288   :  { %724 = vsyncpa [#allocation4], 1 }

</bundles_post_ra>
